<compile_context>
chip_gen: v5e
topology: v5e:2x2
jax: 0.10.0
libtpu: 0.0.40
codegen_flags: <defaults>
</compile_context>

<pallas_src>
import jax
import jax.numpy as jnp
from jax.experimental import pallas as pl
from jax.experimental.pallas import tpu as pltpu


def _projected_kernel(xyz_ref, feat_ref, w1xT_ref, w1fT_ref, b1_ref,
                      wp_ref, bp_ref, o_ref):
    # xyz_ref : (TB, 3, N) bf16     feat_ref: (TB, C, N) bf16
    # w1xT_ref: (D, 3)    bf16      w1fT_ref: (D, C)    bf16
    # b1_ref  : (D, 1)    f32       wp_ref  : (D, P)    f32    bp_ref: (1, P) f32
    # o_ref   : (TB, P)   f32
    TB = xyz_ref.shape[0]

    # Broadcast the tiny first-layer weights across the batch tile so the
    # einsum is a plain batched MXU matmul (no in-kernel transposes):
    #   lhs (TB, D, K) -> K on lanes, rhs (TB, K, N) -> K on sublanes.
    w1x = jnp.broadcast_to(w1xT_ref[...], (TB,) + w1xT_ref.shape)   # (TB, D, 3)
    w1f = jnp.broadcast_to(w1fT_ref[...], (TB,) + w1fT_ref.shape)   # (TB, D, C)

    ht = jnp.einsum('bdc,bcn->bdn', w1x, xyz_ref[...],
                    preferred_element_type=jnp.float32)
    ht = ht + jnp.einsum('bdc,bcn->bdn', w1f, feat_ref[...],
                         preferred_element_type=jnp.float32)        # (TB, D, N) f32

    ht = jnp.maximum(ht + b1_ref[...], 0.0)       # (D,1) lane-broadcast bias + ReLU (f32)
    cls = jnp.max(ht, axis=-1)                    # (TB, D) max-pool over points (lane reduce)

    out = jnp.dot(cls, wp_ref[...], preferred_element_type=jnp.float32) + bp_ref[...]
    o_ref[...] = out.astype(o_ref.dtype)          # (TB, P) sublane-dense store (TB >= 8)


def projected_forward(xyz, features, w1, b1, wp, bp, *, block_b=8,
                      compute_dtype=jnp.bfloat16):
    """xyz: (B, 3, N), features: (B, C, N) -- PyTorch channel-first (NCW) layout."""
    B, three, N = xyz.shape
    C = features.shape[1]
    D = w1.shape[1]
    P = wp.shape[1]
    assert w1.shape[0] == three + C

    TB = min(block_b, B)
    n_blocks = pl.cdiv(B, TB)
    Bp = n_blocks * TB
    if Bp != B:   # pad the batch so every grid step is a full (TB, ...) tile
        pad = Bp - B
        xyz = jnp.pad(xyz, ((0, pad), (0, 0), (0, 0)))
        features = jnp.pad(features, ((0, pad), (0, 0), (0, 0)))

    # One-time (tiny) parameter prep: transposed-domain weights, bf16 streaming.
    w1xT = jnp.transpose(w1[:three]).astype(compute_dtype)    # (D, 3)
    w1fT = jnp.transpose(w1[three:]).astype(compute_dtype)    # (D, C)
    b1c = b1.reshape(D, 1).astype(jnp.float32)
    wpc = wp.astype(jnp.float32)
    bpc = bp.reshape(1, P).astype(jnp.float32)

    xyz_c = xyz.astype(compute_dtype)
    feat_c = features.astype(compute_dtype)

    out = pl.pallas_call(
        _projected_kernel,
        out_shape=jax.ShapeDtypeStruct((Bp, P), jnp.float32),
        grid_spec=pltpu.PrefetchScalarGridSpec(
            num_scalar_prefetch=0,
            grid=(n_blocks,),
            in_specs=[
                pl.BlockSpec((TB, three, N), lambda b: (b, 0, 0)),
                pl.BlockSpec((TB, C, N), lambda b: (b, 0, 0)),
                pl.BlockSpec((D, three), lambda b: (0, 0)),
                pl.BlockSpec((D, C), lambda b: (0, 0)),
                pl.BlockSpec((D, 1), lambda b: (0, 0)),
                pl.BlockSpec((D, P), lambda b: (0, 0)),
                pl.BlockSpec((1, P), lambda b: (0, 0)),
            ],
            # (TB, P) with TB >= 8 keeps writeback sublane-dense; for very
            # large B one could emit a (P, B-tile) transposed output instead.
            out_specs=pl.BlockSpec((TB, P), lambda b: (b, 0)),
        ),
        compiler_params=pltpu.CompilerParams(
            # batch axis shards across v7x's 2 TensorCores (no-op on v5e/v6e)
            dimension_semantics=("parallel",),
            # explicit budget: fits v7x's 64 MiB VMEM as well as v5e/v6e;
            # blocks here are far below this even with double buffering.
            vmem_limit_bytes=32 * 1024 * 1024,
        ),
    )(xyz_c, feat_c, w1xT, w1fT, b1c, wpc, bpc)
    return out[:B]


def projected_reference(xyz, features, w1, b1, wp, bp, compute_dtype=jnp.bfloat16):
    # Mirrors the reference forward's transpose(-1,-2) + concat, with the same
    # bf16-operand / f32-accumulation numerics as the kernel.
    x = jnp.concatenate(
        [jnp.transpose(xyz, (0, 2, 1)), jnp.transpose(features, (0, 2, 1))],
        axis=-1,
    ).astype(compute_dtype)                                     # (B, N, Cin)
    h = jnp.einsum('bnc,cd->bnd', x, w1.astype(compute_dtype),
                   preferred_element_type=jnp.float32)
    h = jnp.maximum(h + b1.reshape(1, 1, -1).astype(jnp.float32), 0.0)
    cls = jnp.max(h, axis=1)                                    # (B, D)
    return jnp.dot(cls, wp.astype(jnp.float32),
                   preferred_element_type=jnp.float32) + bp.reshape(1, -1)


if __name__ == "__main__":
    B, N, C = 16, 64, 5         # batch, points, extra feature channels
    D, P = 32, 32               # ppat embed dim, proj output dim

    key = jax.random.PRNGKey(0)
    k_xyz, k_feat, k_w1, k_b1, k_wp, k_bp = jax.random.split(key, 6)

    xyz = jax.random.normal(k_xyz, (B, 3, N), dtype=jnp.float32)
    features = jax.random.normal(k_feat, (B, C, N), dtype=jnp.float32)

    # Deterministic synthetic parameters (ppat embedding + proj linear).
    w1 = jax.random.normal(k_w1, (3 + C, D), dtype=jnp.float32) * 0.1
    b1 = jax.random.normal(k_b1, (D,), dtype=jnp.float32) * 0.1
    wp = jax.random.normal(k_wp, (D, P), dtype=jnp.float32) * 0.1
    bp = jax.random.normal(k_bp, (P,), dtype=jnp.float32) * 0.1

    out = projected_forward(xyz, features, w1, b1, wp, bp)
    out = jax.block_until_ready(out)

    ref = projected_reference(xyz, features, w1, b1, wp, bp)
    assert out.shape == (B, P)
    assert jnp.allclose(out, ref, atol=2e-3, rtol=2e-3), "mismatch vs reference"

    print("KERNEL_OK")
</pallas_src>

<mosaic_0001>
module attributes {stable_mosaic.version = 11 : i64} {
  func.func @_projected_kernel(%arg0: i32, %arg1: memref<8x3x64xbf16, #tpu.memory_space<vmem>>, %arg2: memref<8x5x64xbf16, #tpu.memory_space<vmem>>, %arg3: memref<32x3xbf16, #tpu.memory_space<vmem>>, %arg4: memref<32x5xbf16, #tpu.memory_space<vmem>>, %arg5: memref<32x1xf32, #tpu.memory_space<vmem>>, %arg6: memref<32x32xf32, #tpu.memory_space<vmem>>, %arg7: memref<1x32xf32, #tpu.memory_space<vmem>>, %arg8: memref<8x32xf32, #tpu.memory_space<vmem>>) attributes {dimension_semantics = [#tpu.dimension_semantics<parallel>], iteration_bounds = array<i64: 2>, scalar_prefetch = 0 : i64, scratch_operands = 0 : i64, tpu.core_type = #tpu.core_type<tc>, window_params = [{transform_indices = @transform_0, window_bounds = array<i64: 8, 3, 64>}, {transform_indices = @transform_1, window_bounds = array<i64: 8, 5, 64>}, {pipeline_mode = #tpu.pipeline_mode<synchronous>, transform_indices = @transform_2, window_bounds = array<i64: 32, 3>}, {pipeline_mode = #tpu.pipeline_mode<synchronous>, transform_indices = @transform_3, window_bounds = array<i64: 32, 5>}, {pipeline_mode = #tpu.pipeline_mode<synchronous>, transform_indices = @transform_4, window_bounds = array<i64: 32, 1>}, {pipeline_mode = #tpu.pipeline_mode<synchronous>, transform_indices = @transform_5, window_bounds = array<i64: 32, 32>}, {pipeline_mode = #tpu.pipeline_mode<synchronous>, transform_indices = @transform_6, window_bounds = array<i64: 1, 32>}, {transform_indices = @transform_7, window_bounds = array<i64: 8, 32>}]} {
    %c0 = arith.constant 0 : index
    %c0_0 = arith.constant 0 : index
    %0 = vector.load %arg3[%c0, %c0_0] : memref<32x3xbf16, #tpu.memory_space<vmem>>, vector<32x3xbf16>
    %1 = vector.shape_cast %0 : vector<32x3xbf16> to vector<1x32x3xbf16>
    %2 = vector.broadcast %1 : vector<1x32x3xbf16> to vector<8x32x3xbf16>
    %c0_1 = arith.constant 0 : index
    %c0_2 = arith.constant 0 : index
    %3 = vector.load %arg4[%c0_1, %c0_2] : memref<32x5xbf16, #tpu.memory_space<vmem>>, vector<32x5xbf16>
    %4 = vector.shape_cast %3 : vector<32x5xbf16> to vector<1x32x5xbf16>
    %5 = vector.broadcast %4 : vector<1x32x5xbf16> to vector<8x32x5xbf16>
    %c0_3 = arith.constant 0 : index
    %c0_4 = arith.constant 0 : index
    %c0_5 = arith.constant 0 : index
    %6 = vector.load %arg1[%c0_3, %c0_4, %c0_5] : memref<8x3x64xbf16, #tpu.memory_space<vmem>>, vector<8x3x64xbf16>
    "tpu.trace_start"() <{level = 10 : i32, message = "bdc,bcn->bdn"}> : () -> ()
    %cst = arith.constant dense<0.000000e+00> : vector<8x32x64xf32>
    %7 = tpu.matmul %2, %6, %cst {dimension_numbers = #tpu.dot_dimension_numbers<[2], [1], [1], [2], [0, 0, 0, 1, 1, 2], [0], [0]>} : vector<8x32x3xbf16>, vector<8x3x64xbf16>, vector<8x32x64xf32> -> vector<8x32x64xf32>
    "tpu.trace_stop"() : () -> ()
    %c0_6 = arith.constant 0 : index
    %c0_7 = arith.constant 0 : index
    %c0_8 = arith.constant 0 : index
    %8 = vector.load %arg2[%c0_6, %c0_7, %c0_8] : memref<8x5x64xbf16, #tpu.memory_space<vmem>>, vector<8x5x64xbf16>
    "tpu.trace_start"() <{level = 10 : i32, message = "bdc,bcn->bdn"}> : () -> ()
    %cst_9 = arith.constant dense<0.000000e+00> : vector<8x32x64xf32>
    %9 = tpu.matmul %5, %8, %cst_9 {dimension_numbers = #tpu.dot_dimension_numbers<[2], [1], [1], [2], [0, 0, 0, 1, 1, 2], [0], [0]>} : vector<8x32x5xbf16>, vector<8x5x64xbf16>, vector<8x32x64xf32> -> vector<8x32x64xf32>
    "tpu.trace_stop"() : () -> ()
    %10 = arith.addf %7, %9 : vector<8x32x64xf32>
    %c0_10 = arith.constant 0 : index
    %c0_11 = arith.constant 0 : index
    %11 = vector.load %arg5[%c0_10, %c0_11] : memref<32x1xf32, #tpu.memory_space<vmem>>, vector<32x1xf32>
    %12 = vector.shape_cast %11 : vector<32x1xf32> to vector<1x32x1xf32>
    %13 = vector.broadcast %12 : vector<1x32x1xf32> to vector<8x32x64xf32>
    %14 = arith.addf %10, %13 : vector<8x32x64xf32>
    %cst_12 = arith.constant 0.000000e+00 : f32
    %15 = vector.broadcast %cst_12 : f32 to vector<8x32x64xf32>
    %16 = arith.maximumf %14, %15 : vector<8x32x64xf32>
    %cst_13 = arith.constant dense<0xFF800000> : vector<8x32xf32>
    %17 = vector.multi_reduction <maximumf>, %16, %cst_13 [2] : vector<8x32x64xf32> to vector<8x32xf32>
    %c0_14 = arith.constant 0 : index
    %c0_15 = arith.constant 0 : index
    %18 = vector.load %arg6[%c0_14, %c0_15] : memref<32x32xf32, #tpu.memory_space<vmem>>, vector<32x32xf32>
    %cst_16 = arith.constant dense<0.000000e+00> : vector<8x32xf32>
    %19 = tpu.matmul %17, %18, %cst_16 {dimension_numbers = #tpu.dot_dimension_numbers<[1], [0], [0], [1], [0, 0, 1, 1], [], []>} : vector<8x32xf32>, vector<32x32xf32>, vector<8x32xf32> -> vector<8x32xf32>
    %c0_17 = arith.constant 0 : index
    %c0_18 = arith.constant 0 : index
    %20 = vector.load %arg7[%c0_17, %c0_18] : memref<1x32xf32, #tpu.memory_space<vmem>>, vector<1x32xf32>
    %21 = vector.broadcast %20 : vector<1x32xf32> to vector<8x32xf32>
    %22 = arith.addf %19, %21 : vector<8x32xf32>
    %c0_19 = arith.constant 0 : index
    %c0_20 = arith.constant 0 : index
    %23 = vector.load %arg8[%c0_19, %c0_20] : memref<8x32xf32, #tpu.memory_space<vmem>>, vector<8x32xf32>
    tpu.vector_store %arg8[%c0_19, %c0_20], %22 {strides = array<i32>} : memref<8x32xf32, #tpu.memory_space<vmem>>, vector<8x32xf32>,
    return
  }
  func.func @transform_0(%arg0: i32) -> (i32, i32, i32) {
    %c0_i32 = arith.constant 0 : i32
    %c0_i32_0 = arith.constant 0 : i32
    %c0_i32_1 = arith.constant 0 : i32
    return %arg0, %c0_i32, %c0_i32_0 : i32, i32, i32
  }
  func.func @transform_1(%arg0: i32) -> (i32, i32, i32) {
    %c0_i32 = arith.constant 0 : i32
    %c0_i32_0 = arith.constant 0 : i32
    %c0_i32_1 = arith.constant 0 : i32
    return %arg0, %c0_i32, %c0_i32_0 : i32, i32, i32
  }
  func.func @transform_2(%arg0: i32) -> (i32, i32) {
    %c0_i32 = arith.constant 0 : i32
    %c0_i32_0 = arith.constant 0 : i32
    %c0_i32_1 = arith.constant 0 : i32
    return %c0_i32, %c0_i32_0 : i32, i32
  }
  func.func @transform_3(%arg0: i32) -> (i32, i32) {
    %c0_i32 = arith.constant 0 : i32
    %c0_i32_0 = arith.constant 0 : i32
    %c0_i32_1 = arith.constant 0 : i32
    return %c0_i32, %c0_i32_0 : i32, i32
  }
  func.func @transform_4(%arg0: i32) -> (i32, i32) {
    %c0_i32 = arith.constant 0 : i32
    %c0_i32_0 = arith.constant 0 : i32
    %c0_i32_1 = arith.constant 0 : i32
    return %c0_i32, %c0_i32_0 : i32, i32
  }
  func.func @transform_5(%arg0: i32) -> (i32, i32) {
    %c0_i32 = arith.constant 0 : i32
    %c0_i32_0 = arith.constant 0 : i32
    %c0_i32_1 = arith.constant 0 : i32
    return %c0_i32, %c0_i32_0 : i32, i32
  }
  func.func @transform_6(%arg0: i32) -> (i32, i32) {
    %c0_i32 = arith.constant 0 : i32
    %c0_i32_0 = arith.constant 0 : i32
    %c0_i32_1 = arith.constant 0 : i32
    return %c0_i32, %c0_i32_0 : i32, i32
  }
  func.func @transform_7(%arg0: i32) -> (i32, i32) {
    %c0_i32 = arith.constant 0 : i32
    %c0_i32_0 = arith.constant 0 : i32
    return %arg0, %c0_i32 : i32, i32
  }
}

</mosaic_0001>

<bundles_post_ra>
// kernel: tpu_custom_call.1
= control target key start
LH: loop header
LB: loop body
LE: loop exit
PB: predicated region body
PF: predicated region fallthrough
CT: control target
= control target key end

     0   :  { %12 = vsyncpa [#allocation3], 0  ;;  %s1753_s0 = inlined_call_operand.vmem [shape: bf16[16,3,64], index: 0, kind: input, shape index: {}]   ;;  %s1754_s1 = inlined_call_operand.vmem [shape: bf16[16,5,64], index: 1, kind: input, shape index: {}]   ;;  %s1755_s2 = inlined_call_operand.vmem [shape: bf16[32,3], index: 2, kind: input, shape index: {}]   ;;  %s1756_s3 = inlined_call_operand.vmem [shape: bf16[32,5], index: 3, kind: input, shape index: {}]   ;;  %s1757_s4 = inlined_call_operand.vmem [shape: f32[32,1], index: 4, kind: input, shape index: {}]   ;;  %s1758_s5 = inlined_call_operand.vmem [shape: f32[32,32], index: 5, kind: input, shape index: {}]   ;;  %s1759_s6 = inlined_call_operand.vmem [shape: f32[1,32], index: 6, kind: input, shape index: {}]   ;;  %s1760_s7 = inlined_call_operand.hbm [shape: f32[16,32], index: 7, kind: output, shape index: {}]  }
   0x1   :  { %14 = vsyncpa [#allocation3 + $0x1], 0  ;;  %s1349_s24 = smov 0   ;;  %s1351_s25 = smov 0  }
   0x2   :  { %s1353_s26 = smov 0   ;;  %s1355_s27 = smov 0  }
   0x3 LB: > { %s1132_s28 = sadd.s32 4294967295, %s1305_s27   ;;  %s1133_s29 = sadd.s32 4294967294, %s1305_s27   ;;  %s1305_s27 = sphi %s1355_s27, %s1766_s27   ;;  %s1301_s26 = sphi %s1353_s26, %s1765_s26   ;;  %s1297_s25 = sphi %s1351_s25, %s1764_s25   ;;  %s1293_s24 = sphi %s1349_s24, %s1763_s24  }
   0x4   : > { %s1372_s30 = sadd.s32 1, %s1305_s27   ;;  %s184_s8 = sadd.s32 1, %s1301_s26 }
   0x5   : > { %s181_s9 = ssub.s32 %s1305_s27, %s1372_s30  ;;  %p194_p0 = scmp.ne.s32.totalorder %s1301_s26, %s1297_s25 }
   0x6   : > { %p182_p1 = scmp.eq.s32.totalorder %s181_s9, 0  ;;  %p195_p2 = scmp.eq.s32.totalorder %s1132_s28, 1 }
   0x7   : > { %p200_p3 = scmp.ne.s32.totalorder %s1297_s25, %s1293_s24  ;;  %p201_p4 = scmp.eq.s32.totalorder %s1133_s29, 1 }
   0x8   : > { %s1382_s10 = scalar_select %p182_p1, %s1301_s26, %s184_s8  }
   0x9   : > { %p1384_p5 = por %p195_p2, %p194_p0  ;;  %p1388_p6 = por %p201_p4, %p200_p3 }
   0xa   : > { %p1136_p7 = scmp.ge.s32.totalorder %s1305_s27, 1  ;;  %p252_p8 = scmp.lt.s32.totalorder %s1305_s27, 3 }
   0xc   : > { %p253_p9 = pnand %p1136_p7, %p252_p8 }
   0xd   : > { %s1394_s13 = sshll.u32 (!%p253_p9), %s1132_s28, 3 }
   0xe   : > { %256 = sbr.rel (%p253_p9) target bundleno = 590 (0x24e), region = 48  ;;  %p290_p10 = scmp.lt.s32.totalorder (!%p253_p9), %s1394_s13, 15 }
   0xf   : > { %s1057_s23 = scalar_lea.hbm (!%p253_p9), %s1760_s7, %s1394_s13 }
  0x13   : > { %vm343_vm0 = vcmask 1041408   ;;  %vm344_vm1 = vcmask 1042432   ;;  %v1307_v0 = vmov 65535   ;;  %s291_s14 = scalar_select %p290_p10, %s1394_s13, 15  ;;  %vm540_vm2 = vcmask 1040384   ;;  %v1197_v14 = vld [vmem:[%s1756_s3] sm:$0xff] }
  0x14   : > { %v345_v1 = vsel %vm343_vm0, 4294967295, %v1307_v0  ;;  %v541_v12 = vsel %vm540_vm2, 4294967295, %v1307_v0  ;;  %vm336_vm3 = vcmask 39936   ;;  %v1198_v26 = vld [vmem:[%s1756_s3 + $0x8] sm:$0xff]  ;;  %v719_v31 = vld [vmem:[%s1757_s4] sm:$0xff]  ;;  %v1308_v32 = vmov 0  }
  0x15   : > { %s1141_s15 = sshll.u32 %s291_s14, 2  ;;  %v346_v2 = vsel %vm344_vm1, %v345_v1, 0  ;;  %s1139_s16 = sshll.u32 %s291_s14, 1  ;;  %v542_v21 = vsel %vm343_vm0, %v541_v12, 0  ;;  %1240 = vset.pattern.permute.xlu0 %v1308_v32  ;;  %1241 = vset.pattern.permute.xlu1 %v1308_v32  ;;  %v720_v33 = vld [vmem:[%s1757_s4 + $0x8] sm:$0xff]  ;;  %v721_v34 = vld [vmem:[%s1757_s4 + $0x10] sm:$0xff] }
  0x16   : > { %s299_s19 = scalar_lea.vmem %s1754_s1, %s1141_s15  ;;  %s1408_s28 = scalar_lea.vmem %s1753_s0, %s1139_s16  ;;  %725 = vperm.xlu0 %1240, %v719_v31   ;;  %735 = vperm.xlu1 %1241, %v721_v34   ;;  %v1195_v43 = vld [vmem:[%s1755_s2] sm:$0xff]  ;;  %vm533_vm4 = vcmask 23552   ;;  %v722_v44 = vld [vmem:[%s1757_s4 + $0x18] sm:$0xff]  ;;  %v1196_v45 = vld [vmem:[%s1755_s2 + $0x8] sm:$0xff]  ;;  %vm807_vm5 = vcmask 523264   ;;  %vm949_vm6 = vcmask 130112  }
  0x17   : > { %v318_v3 = vld [vmem:[%s299_s19] sm:$0x7]  ;;  %v319_v4 = vld [vmem:[%s299_s19 + $0x4] sm:$0x7]  ;;  %v320_v5 = vld [vmem:[%s299_s19 + $0x8] sm:$0x7] }
  0x18   : > { %v348_v6 = vand.u32 %v346_v2, %v318_v3  ;;  %v370_v7 = vand.u32 %v346_v2, %v319_v4  ;;  %v392_v8 = vand.u32 %v346_v2, %v320_v5  ;;  %v321_v9 = vld [vmem:[%s299_s19 + $0xc] sm:$0x7]  ;;  %v322_v10 = vld [vmem:[%s299_s19 + $0x10] sm:$0x7]  ;;  %v324_v11 = vld [vmem:[%s299_s19 + $0x18] sm:$0x7] }
  0x19   : > { %v414_v13 = vand.u32 %v346_v2, %v321_v9  ;;  %v436_v15 = vand.u32 %v346_v2, %v322_v10  ;;  %v480_v16 = vand.u32 %v346_v2, %v324_v11  ;;  %v325_v17 = vld [vmem:[%s299_s19 + $0x1c] sm:$0x7]  ;;  %v323_v18 = vld [vmem:[%s299_s19 + $0x14] sm:$0x7]  ;;  %v310_v22 = vld [vmem:[%s1408_s28] sm:$0x3] }
  0x1a   : > { %357 = vmatpush.bf16.msra.mxu0 %v348_v6  ;;  %379 = vmatpush.bf16.msra.mxu1 %v370_v7  ;;  %v502_v19 = vand.u32 %v346_v2, %v325_v17  ;;  %v458_v20 = vand.u32 %v346_v2, %v323_v18  ;;  %v312_v23 = vld [vmem:[%s1408_s28 + $0x4] sm:$0x3]  ;;  %v544_v24 = vand.u32 %v542_v21, %v310_v22  ;;  %v313_v27 = vld [vmem:[%s1408_s28 + $0x6] sm:$0x3]  ;;  %v311_v28 = vld [vmem:[%s1408_s28 + $0x2] sm:$0x3] }
  0x1b   : > { %401 = vmatpush.bf16.msra.mxu2 %v392_v8  ;;  %423 = vmatpush.bf16.msra.mxu3 %v414_v13  ;;  %v588_v25 = vand.u32 %v542_v21, %v312_v23  ;;  %v610_v29 = vand.u32 %v542_v21, %v313_v27  ;;  %v566_v30 = vand.u32 %v542_v21, %v311_v28  ;;  %v314_v35 = vld [vmem:[%s1408_s28 + $0x8] sm:$0x3]  ;;  %v315_v36 = vld [vmem:[%s1408_s28 + $0xa] sm:$0x3]  ;;  %v316_v39 = vld [vmem:[%s1408_s28 + $0xc] sm:$0x3] }
  0x1c   : > { %v632_v37 = vand.u32 %v542_v21, %v314_v35  ;;  %v654_v38 = vand.u32 %v542_v21, %v315_v36  ;;  %v317_v40 = vld [vmem:[%s1408_s28 + $0xe] sm:$0x3]  ;;  %v676_v41 = vand.u32 %v542_v21, %v316_v39  ;;  %vm953_vm7 = vcmask 195712   ;;  %s286_s19 = sand.u32 1, %s1297_s25   ;;  %s1061_s14 = sshll.u32 %s1057_s23, 4  ;;  %s1062_s14 = int_to_ptr.hbm [resolvable:$true] %s1061_s14 }
  0x1d   : > { %1150 = vmatmul.msk.bf16.vlgmr.msra.gmra.mxu0 %vm336_vm3, %v1197_v14  ;;  %1152 = vmatmul.msk.bf16.vlgmr.msra.gmra.mxu1 %vm336_vm3, %v1197_v14  ;;  %v698_v42 = vand.u32 %v542_v21, %v317_v40  ;;  %vm957_vm8 = vcmask 261312   ;;  %vm1008_vm9 = vcmask 1041409   ;;  %vm1010_vm10 = vcmask 1042434   ;;  %s1137_s20 = sshll.u32 %s286_s19, 3  ;;  %s1047_s15 = scalar_lea.sflag [#allocation3], %s286_s19 }
  0x1e   : > { %445 = vmatpush.bf16.msrb.mxu0 %v436_v15  ;;  %1154 = vmatmul.msk.bf16.vlgmr.msra.gmra.mxu2 %vm336_vm3, %v1197_v14  ;;  %vm1012_vm11 = vcmask 1043459   ;;  %vm1014_vm12 = vcmask 1044484   ;;  %vm1016_vm13 = vcmask 1045509   ;;  %vm1018_vm14 = vcmask 1046534   ;;  %s288_s8 = scalar_lea.vmem [#allocation2], %s1137_s20  ;;  %s1257_s16 = sshra.s32 %s1062_s14, 4  ;;  %s1258_s16 = int_to_ptr.hbm [resolvable:$true] %s1257_s16 }
  0x1f   : > { %489 = vmatpush.bf16.msrb.mxu2 %v480_v16  ;;  %1156 = vmatmul.msk.bf16.vlgmr.msra.gmra.mxu3 %vm336_vm3, %v1197_v14  ;;  %vm1020_vm15 = vcmask 1047559   ;;  %vm1022_vm0 = vcmask 261120   ;;  %s1059_s9 = sshll.u32 %s288_s8, 4  ;;  %s1259_s17 = scalar_lea.hbm %s1258_s16, 8  ;;  %s1060_s9 = int_to_ptr.vmem [resolvable:$true] %s1059_s9 }
  0x20   : > { %511 = vmatpush.bf16.msrb.mxu3 %v502_v19  ;;  %467 = vmatpush.bf16.msrb.mxu1 %v458_v20  ;;  %p1260_p11 = scmp.ne.s32.totalorder %s1258_s16, %s1259_s17  ;;  %s1263_s20 = scalar_lea.hbm %s1760_s7, 16 }
  0x21   : > { %730 = vperm.xlu0 %1240, %v720_v33   ;;  %740 = vperm.xlu1 %1241, %v722_v44   ;;  %p1264_p0 = scmp.lt.s32.totalorder %s1258_s16, %s1760_s7  ;;  %p1265_p1 = scmp.lt.s32.totalorder %s1263_s20, %s1259_s17 }
  0x22   : > { %553 = vmatpush.bf16.msra.mxu0 %v544_v24  ;;  %p1261_p12 = pnand %p1260_p11, %p1384_p5 }
  0x23   : > { %597 = vmatpush.bf16.msra.mxu2 %v588_v25  ;;  %p1266_p2 = por %p1265_p1, %p1264_p0 }
  0x24   : > { %619 = vmatpush.bf16.msra.mxu3 %v610_v29  ;;  %575 = vmatpush.bf16.msra.mxu1 %v566_v30  ;;  %p1262_p13 = pneg %p1261_p12 }
  0x26   : > { %p1267_p3 = pnand %p1266_p2, %p1262_p13 }
  0x2d   : > { %1151 = vmatmul.msk.bf16.gmra.mxu0 %vm336_vm3, %v1198_v26  ;;  %1153 = vmatmul.msk.bf16.gmra.mxu1 %vm336_vm3, %v1198_v26 }
  0x2e   : > { %1155 = vmatmul.msk.bf16.gmra.mxu2 %vm336_vm3, %v1198_v26 }
  0x2f   : > { %1157 = vmatmul.msk.bf16.gmra.mxu3 %vm336_vm3, %v1198_v26 }
  0x3d   : > { %1158 = vmatmul.msk.bf16.vlgmr.msrb.gmra.mxu0 %vm336_vm3, %v1197_v14  ;;  %1160 = vmatmul.msk.bf16.vlgmr.msrb.gmra.mxu1 %vm336_vm3, %v1197_v14 }
  0x3e   : > { %1162 = vmatmul.msk.bf16.vlgmr.msrb.gmra.mxu2 %vm336_vm3, %v1197_v14  ;;  %641 = vmatpush.bf16.msrb.mxu0 %v632_v37 }
  0x3f   : > { %1164 = vmatmul.msk.bf16.vlgmr.msrb.gmra.mxu3 %vm336_vm3, %v1197_v14  ;;  %663 = vmatpush.bf16.msrb.mxu1 %v654_v38 }
  0x40   : > { %685 = vmatpush.bf16.msrb.mxu2 %v676_v41  ;;  %707 = vmatpush.bf16.msrb.mxu3 %v698_v42 }
  0x4d   : > { %1159 = vmatmul.msk.bf16.gmra.mxu0 %vm336_vm3, %v1198_v26  ;;  %1161 = vmatmul.msk.bf16.gmra.mxu1 %vm336_vm3, %v1198_v26 }
  0x4e   : > { %1163 = vmatmul.msk.bf16.gmra.mxu2 %vm336_vm3, %v1198_v26 }
  0x4f   : > { %1165 = vmatmul.msk.bf16.gmra.mxu3 %vm336_vm3, %v1198_v26 }
  0x5d   : > { %1174 = vmatmul.msk.bf16.vlgmr.msra.gmra.mxu0 %vm533_vm4, %v1195_v43  ;;  %1176 = vmatmul.msk.bf16.vlgmr.msra.gmra.mxu1 %vm533_vm4, %v1195_v43 }
  0x5e   : > { %1178 = vmatmul.msk.bf16.vlgmr.msra.gmra.mxu2 %vm533_vm4, %v1195_v43 }
  0x5f   : > { %1180 = vmatmul.msk.bf16.vlgmr.msra.gmra.mxu3 %vm533_vm4, %v1195_v43 }
  0x6d   : > { %1175 = vmatmul.msk.bf16.gmra.mxu0 %vm533_vm4, %v1196_v45  ;;  %1177 = vmatmul.msk.bf16.gmra.mxu1 %vm533_vm4, %v1196_v45 }
  0x6e   : > { %1179 = vmatmul.msk.bf16.gmra.mxu2 %vm533_vm4, %v1196_v45 }
  0x6f   : > { %1181 = vmatmul.msk.bf16.gmra.mxu3 %vm533_vm4, %v1196_v45 }
  0x7d   : > { %1182 = vmatmul.msk.bf16.vlgmr.msrb.gmra.mxu0 %vm533_vm4, %v1195_v43  ;;  %1184 = vmatmul.msk.bf16.vlgmr.msrb.gmra.mxu1 %vm533_vm4, %v1195_v43 }
  0x7e   : > { %1186 = vmatmul.msk.bf16.vlgmr.msrb.gmra.mxu2 %vm533_vm4, %v1195_v43 }
  0x7f   : > { %1188 = vmatmul.msk.bf16.vlgmr.msrb.gmra.mxu3 %vm533_vm4, %v1195_v43 }
  0x88   : > { %v1524_v18 = vpop.permute.xlu0 %725  ;;  %v1532_v37 = vpop.permute.xlu1 %735 }
  0x8d   : > { %1183 = vmatmul.msk.bf16.gmra.mxu0 %vm533_vm4, %v1196_v45  ;;  %1185 = vmatmul.msk.bf16.gmra.mxu1 %vm533_vm4, %v1196_v45 }
  0x8e   : > { %1187 = vmatmul.msk.bf16.gmra.mxu2 %vm533_vm4, %v1196_v45 }
  0x8f   : > { %1189 = vmatmul.msk.bf16.gmra.mxu3 %vm533_vm4, %v1196_v45 }
  0x93   : > { %v1534_v38 = vpop.permute.xlu0 %730 }
  0x9a   : > { %v359_v46 = vpop.f32.mrf.mxu0  ;;  %v381_v47 = vpop.f32.mrf.mxu1 }
  0xa1   : > { %v403_v48 = vpop.f32.mrf.mxu2 }
  0xa2   : > { %v425_v49 = vpop.f32.mrf.mxu3  ;;  %v361_v50 = vpop.f32.mrf.mxu0 }
  0xa3   : > { %v383_v51 = vpop.f32.mrf.mxu1 }
  0xa9   : > { %v1472_v52 = vpop.f32.mrf.mxu2 }
  0xaa   : > { %v1474_v53 = vpop.f32.mrf.mxu3  ;;  %v1476_v54 = vpop.f32.mrf.mxu0 }
  0xab   : > { %v1478_v55 = vpop.f32.mrf.mxu1 }
  0xb1   : > { %v1480_v56 = vpop.f32.mrf.mxu2 }
  0xb2   : > { %v1482_v57 = vpop.f32.mrf.mxu3  ;;  %v1484_v58 = vpop.f32.mrf.mxu0 }
  0xb3   : > { %v1486_v59 = vpop.f32.mrf.mxu1 }
  0xb9   : > { %v1488_v60 = vpop.f32.mrf.mxu2 }
  0xba   : > { %v1490_v61 = vpop.f32.mrf.mxu3  ;;  %v1492_v62 = vpop.f32.mrf.mxu0 }
  0xbb   : > { %v1494_v63 = vpop.f32.mrf.mxu1 }
  0xc1   : > { %v1496_v0 = vpop.f32.mrf.mxu2 }
  0xc2   : > { %v1498_v1 = vpop.f32.mrf.mxu3  ;;  %v1500_v2 = vpop.f32.mrf.mxu0 }
  0xc3   : > { %v1502_v3 = vpop.f32.mrf.mxu1 }
  0xc9   : > { %v1504_v4 = vpop.f32.mrf.mxu2 }
  0xca   : > { %v1506_v5 = vpop.f32.mrf.mxu3  ;;  %v1508_v6 = vpop.f32.mrf.mxu0 }
  0xcb   : > { %v1510_v7 = vpop.f32.mrf.mxu1 }
  0xd1   : > { %v1512_v8 = vpop.f32.mrf.mxu2 }
  0xd2   : > { %v1514_v9 = vpop.f32.mrf.mxu3  ;;  %v1516_v10 = vpop.f32.mrf.mxu0 }
  0xd3   : > { %v1518_v11 = vpop.f32.mrf.mxu1 }
  0xd9   : > { %v1520_v12 = vpop.f32.mrf.mxu2 }
  0xda   : > { %v1522_v13 = vpop.f32.mrf.mxu3  ;;  %v555_v14 = vpop.f32.mrf.mxu0 }
  0xdb   : > { %v577_v15 = vpop.f32.mrf.mxu1  ;;  %v556_v16 = vadd.f32 %v555_v14, %v359_v46 }
  0xdc   : > { %v578_v17 = vadd.f32 %v577_v15, %v381_v47 }
  0xdd   : > { %v743_v20 = vadd.f32 %v1524_v18, %v556_v16 }
  0xde   : > { %v747_v19 = vadd.f32 %v1524_v18, %v578_v17 }
  0xdf   : > { %v775_v22 = vmax.f32 %v743_v20, 0.0 }
  0xe0   : > { %v779_v21 = vmax.f32 %v747_v19, 0.0 }
  0xe1   : > { %v599_v23 = vpop.f32.mrf.mxu2  ;;  %v808_v26 = vsel %vm807_vm5, %v775_v22, -inf }
  0xe2   : > { %v621_v24 = vpop.f32.mrf.mxu3  ;;  %v820_v25 = vsel %vm807_vm5, %v779_v21, -inf  ;;  %v600_v27 = vadd.f32 %v599_v23, %v403_v48  ;;  %v557_v30 = vpop.f32.mrf.mxu0  ;;  %809 = vmax.xlane.f32.xlu2 %v808_v26 }
  0xe3   : > { %v622_v28 = vadd.f32 %v621_v24, %v425_v49  ;;  %v579_v29 = vpop.f32.mrf.mxu1  ;;  %821 = vmax.xlane.f32.xlu0 %v820_v25  ;;  %v558_v34 = vadd.f32 %v557_v30, %v361_v50 }
  0xe4   : > { %v751_v31 = vadd.f32 %v1524_v18, %v600_v27  ;;  %v580_v33 = vadd.f32 %v579_v29, %v383_v51  ;;  %v1544_v51 = vpop.permute.xlu1 %740 }
  0xe5   : > { %v755_v32 = vadd.f32 %v1524_v18, %v622_v28  ;;  %v744_v41 = vadd.f32 %v1534_v38, %v558_v34 }
  0xe6   : > { %v783_v36 = vmax.f32 %v751_v31, 0.0  ;;  %v748_v39 = vadd.f32 %v1534_v38, %v580_v33 }
  0xe7   : > { %v787_v35 = vmax.f32 %v755_v32, 0.0  ;;  %v776_v49 = vmax.f32 %v744_v41, 0.0 }
  0xe8   : > { %v832_v44 = vsel %vm807_vm5, %v783_v36, -inf  ;;  %v780_v47 = vmax.f32 %v748_v39, 0.0 }
  0xe9   : > { %v844_v40 = vsel %vm807_vm5, %v787_v35, -inf  ;;  %v601_v43 = vpop.f32.mrf.mxu2  ;;  %v811_v17 = vsel %vm807_vm5, %v776_v49, -inf }
  0xea   : > { %v623_v42 = vpop.f32.mrf.mxu3  ;;  %845 = vmax.xlane.f32.xlu1 %v844_v40  ;;  %v560_v45 = vpop.f32.mrf.mxu0  ;;  %833 = vmax.xlane.f32.xlu2 %v832_v44  ;;  %v602_v48 = vadd.f32 %v601_v43, %v1472_v52  ;;  %v823_v50 = vsel %vm807_vm5, %v780_v47, -inf }
  0xeb   : > { %v1540_v46 = vpop.f32.mrf.mxu1  ;;  %v624_v25 = vadd.f32 %v623_v42, %v1474_v53  ;;  %v561_v44 = vadd.f32 %v560_v45, %v1476_v54 }
  0xec   : > { %v752_v14 = vadd.f32 %v1534_v38, %v602_v48 }
  0xed   : > { %v756_v31 = vadd.f32 %v1534_v38, %v624_v25  ;;  %v745_v54 = vadd.f32 %v1532_v37, %v561_v44 }
  0xee   : > { %v784_v26 = vmax.f32 %v752_v14, 0.0 }
  0xef   : > { %v788_v48 = vmax.f32 %v756_v31, 0.0 }
  0xf0   : > { %v835_v33 = vsel %vm807_vm5, %v784_v26, -inf }
  0xf1   : > { %v604_v15 = vpop.f32.mrf.mxu2 }
  0xf2   : > { %v626_v16 = vpop.f32.mrf.mxu3  ;;  %824 = vmax.xlane.f32.xlu1 %v823_v50  ;;  %v605_v19 = vadd.f32 %v604_v15, %v1480_v56  ;;  %v1550_v21 = vpop.f32.mrf.mxu0  ;;  %812 = vmax.xlane.f32.xlu2 %v811_v17 }
  0xf3   : > { %v627_v20 = vadd.f32 %v626_v16, %v1482_v57  ;;  %v584_v22 = vpop.f32.mrf.mxu1  ;;  %v847_v16 = vsel %vm807_vm5, %v788_v48, -inf }
  0xf4   : > { %v585_v52 = vadd.f32 %v584_v22, %v1486_v59  ;;  %v753_v23 = vadd.f32 %v1532_v37, %v605_v19 }
  0xf5   : > { %v757_v24 = vadd.f32 %v1532_v37, %v627_v20 }
  0xf6   : > { %v750_v27 = vadd.f32 %v1544_v51, %v585_v52  ;;  %v785_v29 = vmax.f32 %v753_v23, 0.0 }
  0xf7   : > { %v789_v28 = vmax.f32 %v757_v24, 0.0 }
  0xf8   : > { %v782_v56 = vmax.f32 %v750_v27, 0.0  ;;  %v838_v30 = vsel %vm807_vm5, %v785_v29, -inf  ;;  %v583_v27 = vadd.f32 %v1540_v46, %v1478_v55 }
  0xf9   : > { %v850_v57 = vsel %vm807_vm5, %v789_v28, -inf  ;;  %v606_v32 = vpop.f32.mrf.mxu2  ;;  %839 = vmax.xlane.f32.xlu0 %v838_v30  ;;  %v777_v28 = vmax.f32 %v745_v54, 0.0 }
  0xfa   : > { %v628_v59 = vpop.f32.mrf.mxu3  ;;  %851 = vmax.xlane.f32.xlu1 %v850_v57  ;;  %v1562_v53 = vsel %vm807_vm5, %v782_v56, -inf  ;;  %v607_v34 = vadd.f32 %v606_v32, %v1488_v60  ;;  %v643_v36 = vpop.f32.mrf.mxu0  ;;  %836 = vmax.xlane.f32.xlu2 %v835_v33 }
  0xfb   : > { %v629_v35 = vadd.f32 %v628_v59, %v1490_v61  ;;  %v665_v39 = vpop.f32.mrf.mxu1  ;;  %v644_v40 = vadd.f32 %v643_v36, %v1492_v62  ;;  %v814_v55 = vsel %vm807_vm5, %v777_v28, -inf }
  0xfc   : > { %v666_v41 = vadd.f32 %v665_v39, %v1494_v63  ;;  %v754_v42 = vadd.f32 %v1544_v51, %v607_v34 }
  0xfd   : > { %v758_v43 = vadd.f32 %v1544_v51, %v629_v35  ;;  %v759_v47 = vadd.f32 %v1524_v18, %v644_v40  ;;  %v563_v40 = vadd.f32 %v1550_v21, %v1484_v58 }
  0xfe   : > { %v786_v60 = vmax.f32 %v754_v42, 0.0  ;;  %v763_v61 = vadd.f32 %v1524_v18, %v666_v41 }
  0xff   : > { %v790_v49 = vmax.f32 %v758_v43, 0.0  ;;  %v791_v50 = vmax.f32 %v759_v47, 0.0  ;;  %v746_v58 = vadd.f32 %v1544_v51, %v563_v40 }
 0x100   : > { %v841_v62 = vsel %vm807_vm5, %v786_v60, -inf  ;;  %v795_v52 = vmax.f32 %v763_v61, 0.0 }
 0x101   : > { %v853_v14 = vsel %vm807_vm5, %v790_v49, -inf  ;;  %v687_v15 = vpop.f32.mrf.mxu2  ;;  %842 = vmax.xlane.f32.xlu0 %v841_v62  ;;  %v1578_v45 = vsel %vm807_vm5, %v791_v50, -inf }
 0x102   : > { %v709_v63 = vpop.f32.mrf.mxu3  ;;  %854 = vmax.xlane.f32.xlu1 %v853_v14  ;;  %v688_v17 = vadd.f32 %v687_v15, %v1496_v0  ;;  %v645_v20 = vpop.f32.mrf.mxu0  ;;  %848 = vmax.xlane.f32.xlu2 %v847_v16 }
 0x103   : > { %v710_v19 = vadd.f32 %v709_v63, %v1498_v1  ;;  %v667_v22 = vpop.f32.mrf.mxu1  ;;  %v646_v25 = vadd.f32 %v645_v20, %v1500_v2  ;;  %v868_v1 = vsel %vm807_vm5, %v795_v52, -inf  ;;  %v778_v20 = vmax.f32 %v746_v58, 0.0 }
 0x104   : > { %v767_v23 = vadd.f32 %v1524_v18, %v688_v17  ;;  %v668_v26 = vadd.f32 %v667_v22, %v1502_v3  ;;  %v749_v3 = vadd.f32 %v1532_v37, %v583_v27 }
 0x105   : > { %v771_v24 = vadd.f32 %v1524_v18, %v710_v19  ;;  %v760_v56 = vadd.f32 %v1534_v38, %v646_v25  ;;  %v817_v27 = vsel %vm807_vm5, %v778_v20, -inf }
 0x106   : > { %v799_v29 = vmax.f32 %v767_v23, 0.0  ;;  %v764_v57 = vadd.f32 %v1534_v38, %v668_v26  ;;  %v781_v42 = vmax.f32 %v749_v3, 0.0 }
 0x107   : > { %v803_v0 = vmax.f32 %v771_v24, 0.0  ;;  %v792_v39 = vmax.f32 %v760_v56, 0.0 }
 0x108   : > { %v880_v30 = vsel %vm807_vm5, %v799_v29, -inf  ;;  %v796_v36 = vmax.f32 %v764_v57, 0.0  ;;  %v826_v60 = vsel %vm807_vm5, %v781_v42, -inf }
 0x109   : > { %v1593_v18 = vsel %vm807_vm5, %v803_v0, -inf  ;;  %v689_v2 = vpop.f32.mrf.mxu2  ;;  %869 = vmax.xlane.f32.xlu0 %v868_v1 }
 0x10a   : > { %v711_v31 = vpop.f32.mrf.mxu3  ;;  %881 = vmax.xlane.f32.xlu1 %v880_v30  ;;  %v690_v46 = vadd.f32 %v689_v2, %v1504_v4  ;;  %v648_v32 = vpop.f32.mrf.mxu0  ;;  %815 = vmax.xlane.f32.xlu2 %v814_v55  ;;  %v871_v47 = vsel %vm807_vm5, %v796_v36, -inf }
 0x10b   : > { %v670_v59 = vpop.f32.mrf.mxu1  ;;  %v649_v33 = vadd.f32 %v648_v32, %v1508_v6  ;;  %v712_v35 = vadd.f32 %v711_v31, %v1506_v5  ;;  %v859_v6 = vsel %vm807_vm5, %v792_v39, -inf }
 0x10c   : > { %v768_v34 = vadd.f32 %v1534_v38, %v690_v46  ;;  %v671_v63 = vadd.f32 %v670_v59, %v1510_v7 }
 0x10d   : > { %v761_v41 = vadd.f32 %v1532_v37, %v649_v33  ;;  %v772_v4 = vadd.f32 %v1534_v38, %v712_v35 }
 0x10e   : > { %v800_v43 = vmax.f32 %v768_v34, 0.0 }
 0x10f   : > { %v793_v44 = vmax.f32 %v761_v41, 0.0  ;;  %v804_v17 = vmax.f32 %v772_v4, 0.0 }
 0x110   : > { %v883_v48 = vsel %vm807_vm5, %v800_v43, -inf }
 0x111   : > { %v692_v49 = vpop.f32.mrf.mxu2  ;;  %860 = vmax.xlane.f32.xlu0 %v859_v6  ;;  %v862_v21 = vsel %vm807_vm5, %v793_v44, -inf  ;;  %v895_v7 = vsel %vm807_vm5, %v804_v17, -inf }
 0x112   : > { %v714_v5 = vpop.f32.mrf.mxu3  ;;  %872 = vmax.xlane.f32.xlu1 %v871_v47  ;;  %v693_v61 = vadd.f32 %v692_v49, %v1512_v8  ;;  %v650_v50 = vpop.f32.mrf.mxu0  ;;  %827 = vmax.xlane.f32.xlu2 %v826_v60 }
 0x113   : > { %v715_v38 = vadd.f32 %v714_v5, %v1514_v9  ;;  %v672_v14 = vpop.f32.mrf.mxu1  ;;  %v651_v62 = vadd.f32 %v650_v50, %v1516_v10  ;;  %v765_v10 = vadd.f32 %v1532_v37, %v671_v63  ;;  %v907_v5 = vld [vmem:[%s1758_s5 + $0x18] sm:$0xff] }
 0x114   : > { %v673_v15 = vadd.f32 %v672_v14, %v1518_v11  ;;  %v769_v16 = vadd.f32 %v1532_v37, %v693_v61  ;;  %1037 = vmatpush.msra.mxu0 %v907_v5 }
 0x115   : > { %v773_v54 = vadd.f32 %v1532_v37, %v715_v38  ;;  %v762_v19 = vadd.f32 %v1544_v51, %v651_v62  ;;  %v797_v57 = vmax.f32 %v765_v10, 0.0  ;;  %v906_v62 = vld [vmem:[%s1758_s5 + $0x10] sm:$0xff] }
 0x116   : > { %v766_v8 = vadd.f32 %v1544_v51, %v673_v15  ;;  %v801_v9 = vmax.f32 %v769_v16, 0.0  ;;  %1038 = vmatpush.msra.mxu0 %v906_v62 }
 0x117   : > { %v805_v22 = vmax.f32 %v773_v54, 0.0  ;;  %v794_v23 = vmax.f32 %v762_v19, 0.0  ;;  %v874_v55 = vsel %vm807_vm5, %v797_v57, -inf  ;;  %v904_v57 = vld [vmem:[%s1758_s5] sm:$0xff] }
 0x118   : > { %v798_v52 = vmax.f32 %v766_v8, 0.0  ;;  %v886_v11 = vsel %vm807_vm5, %v801_v9, -inf }
 0x119   : > { %v898_v24 = vsel %vm807_vm5, %v805_v22, -inf  ;;  %v694_v25 = vpop.f32.mrf.mxu2  ;;  %896 = vmax.xlane.f32.xlu0 %v895_v7  ;;  %v865_v29 = vsel %vm807_vm5, %v794_v23, -inf }
 0x11a   : > { %v716_v26 = vpop.f32.mrf.mxu3  ;;  %887 = vmax.xlane.f32.xlu1 %v886_v11  ;;  %v877_v28 = vsel %vm807_vm5, %v798_v52, -inf  ;;  %v695_v0 = vadd.f32 %v694_v25, %v1520_v12  ;;  %818 = vmax.xlane.f32.xlu2 %v817_v27 }
 0x11b   : > { %v717_v37 = vadd.f32 %v716_v26, %v1522_v13  ;;  %v905_v26 = vld [vmem:[%s1758_s5 + $0x8] sm:$0xff] }
 0x11c   : > { %v770_v1 = vadd.f32 %v1544_v51, %v695_v0  ;;  %1039 = vmatpush.msra.mxu0 %v905_v26 }
 0x11d   : > { %v774_v56 = vadd.f32 %v1544_v51, %v717_v37  ;;  %v944_v51 = vlaneseq }
 0x11e   : > { %v802_v30 = vmax.f32 %v770_v1, 0.0  ;;  %1040 = vmatpush.msra.mxu0 %v904_v57 }
 0x11f   : > { %v806_v2 = vmax.f32 %v774_v56, 0.0  ;;  %v1637_v46 = vand.u32 127, %v944_v51 }
 0x120   : > { %v889_v31 = vsel %vm807_vm5, %v802_v30, -inf }
 0x121   : > { %v901_v3 = vsel %vm807_vm5, %v806_v2, -inf  ;;  %875 = vmax.xlane.f32.xlu0 %v874_v55  ;;  %v1640_v32 = vadd.s32 4294967288, %v1637_v46  ;;  %v1649_v42 = vadd.s32 4294967280, %v1637_v46  ;;  %v1658_v61 = vadd.s32 4294967272, %v1637_v46 }
 0x122   : > { %890 = vmax.xlane.f32.xlu1 %v889_v31  ;;  %830 = vmax.xlane.f32.xlu2 %v1562_v53 }
 0x129   : > { %878 = vmax.xlane.f32.xlu0 %v877_v28 }
 0x12a   : > { %857 = vmax.xlane.f32.xlu2 %v1578_v45 }
 0x131   : > { %902 = vmax.xlane.f32.xlu0 %v901_v3 }
 0x132   : > { %893 = vmax.xlane.f32.xlu2 %v1593_v18 }
 0x13a   : > { %884 = vmax.xlane.f32.xlu2 %v883_v48 }
 0x142   : > { %863 = vmax.xlane.f32.xlu2 %v862_v21 }
 0x14a   : > { %866 = vmax.xlane.f32.xlu2 %v865_v29 }
 0x152   : > { %899 = vmax.xlane.f32.xlu2 %v898_v24 }
 0x155   : > { %v810_v12 = vpop.xlane.xlu2 %809 }
 0x156   : > { %v946_v53 = vperm.slane %v810_v12, %v1637_v46  ;;  %v822_v40 = vpop.xlane.xlu0 %821 }
 0x157   : > { %v959_v63 = vperm.slane %v822_v40, %v1637_v46 }
 0x15d   : > { %v834_v13 = vpop.xlane.xlu2 %833  ;;  %v846_v41 = vpop.xlane.xlu1 %845 }
 0x15e   : > { %v966_v34 = vperm.slane %v834_v13, %v1637_v46  ;;  %v973_v38 = vperm.slane %v846_v41, %v1637_v46 }
 0x165   : > { %v813_v59 = vpop.xlane.xlu2 %812  ;;  %v825_v6 = vpop.xlane.xlu1 %824 }
 0x166   : > { %v948_v45 = vperm.slane %v813_v59, %v1640_v32  ;;  %v960_v50 = vperm.slane %v825_v6, %v1640_v32 }
 0x168   : > { %v950_v18 = vsel %vm949_vm6, %v948_v45, %v946_v53  ;;  %v961_v22 = vsel %vm949_vm6, %v960_v50, %v959_v63 }
 0x16c   : > { %v840_v44 = vpop.xlane.xlu0 %839 }
 0x16d   : > { %v837_v33 = vpop.xlane.xlu2 %836  ;;  %v852_v60 = vpop.xlane.xlu1 %851  ;;  %v969_v19 = vperm.slane %v840_v44, %v1649_v42 }
 0x16e   : > { %v967_v35 = vperm.slane %v837_v33, %v1640_v32  ;;  %v976_v17 = vperm.slane %v852_v60, %v1649_v42 }
 0x170   : > { %v968_v36 = vsel %vm949_vm6, %v967_v35, %v966_v34 }
 0x171   : > { %v970_v23 = vsel %vm953_vm7, %v969_v19, %v968_v36 }
 0x174   : > { %v843_v49 = vpop.xlane.xlu0 %842 }
 0x175   : > { %v849_v39 = vpop.xlane.xlu2 %848  ;;  %v855_v8 = vpop.xlane.xlu1 %854  ;;  %v971_v20 = vperm.slane %v843_v49, %v1658_v61 }
 0x176   : > { %v974_v21 = vperm.slane %v849_v39, %v1640_v32  ;;  %v978_v7 = vperm.slane %v855_v8, %v1658_v61 }
 0x177   : > { %v972_v27 = vsel %vm957_vm8, %v971_v20, %v970_v23 }
 0x178   : > { %v975_v16 = vsel %vm949_vm6, %v974_v21, %v973_v38 }
 0x179   : > { %v977_v10 = vsel %vm953_vm7, %v976_v17, %v975_v16 }
 0x17a   : > { %v979_v29 = vsel %vm957_vm8, %v978_v7, %v977_v10 }
 0x17c   : > { %v870_v14 = vpop.xlane.xlu0 %869 }
 0x17d   : > { %v816_v43 = vpop.xlane.xlu2 %815  ;;  %v882_v30 = vpop.xlane.xlu1 %881 }
 0x17e   : > { %v952_v4 = vperm.slane %v816_v43, %v1649_v42  ;;  %v994_v40 = vperm.slane %v882_v30, %v1637_v46  ;;  %v987_v43 = vperm.slane %v870_v14, %v1637_v46 }
 0x180   : > { %v954_v47 = vsel %vm953_vm7, %v952_v4, %v950_v18 }
 0x184   : > { %v861_v1 = vpop.xlane.xlu0 %860 }
 0x185   : > { %v828_v48 = vpop.xlane.xlu2 %827  ;;  %v873_v3 = vpop.xlane.xlu1 %872  ;;  %v981_v18 = vperm.slane %v861_v1, %v1640_v32 }
 0x186   : > { %v962_v15 = vperm.slane %v828_v48, %v1649_v42  ;;  %v988_v34 = vperm.slane %v873_v3, %v1640_v32 }
 0x188   : > { %v963_v11 = vsel %vm953_vm7, %v962_v15, %v961_v22  ;;  %v989_v6 = vsel %vm949_vm6, %v988_v34, %v987_v43 }
 0x18c   : > { %v897_v31 = vpop.xlane.xlu0 %896 }
 0x18d   : > { %v819_v58 = vpop.xlane.xlu2 %818  ;;  %v888_v51 = vpop.xlane.xlu1 %887  ;;  %v1002_v50 = vperm.slane %v897_v31, %v1640_v32 }
 0x18e   : > { %v956_v54 = vperm.slane %v819_v58, %v1658_v61  ;;  %v997_v49 = vperm.slane %v888_v51, %v1649_v42 }
 0x190   : > { %v958_v24 = vsel %vm957_vm8, %v956_v54, %v954_v47 }
 0x194   : > { %v876_v12 = vpop.xlane.xlu0 %875 }
 0x195   : > { %v831_v9 = vpop.xlane.xlu2 %830  ;;  %v990_v44 = vperm.slane %v876_v12, %v1649_v42  ;;  %v891_v5 = vpop.xlane.xlu1 %890 }
 0x196   : > { %v964_v52 = vperm.slane %v831_v9, %v1658_v61  ;;  %v999_v63 = vperm.slane %v891_v5, %v1658_v61 }
 0x197   : > { %v991_v21 = vsel %vm953_vm7, %v990_v44, %v989_v6 }
 0x198   : > { %v965_v25 = vsel %vm957_vm8, %v964_v52, %v963_v11 }
 0x199   : > { %v1009_v28 = vsel %vm1008_vm9, %v965_v25, %v958_v24 }
 0x19a   : > { %v1011_v0 = vsel %vm1010_vm10, %v972_v27, %v1009_v28 }
 0x19b   : > { %v1013_v37 = vsel %vm1012_vm11, %v979_v29, %v1011_v0 }
 0x19c   : > { %v879_v59 = vpop.xlane.xlu0 %878 }
 0x19d   : > { %v858_v56 = vpop.xlane.xlu2 %857  ;;  %v992_v47 = vperm.slane %v879_v59, %v1658_v61 }
 0x19e   : > { %v980_v53 = vperm.slane %v858_v56, %v1637_v46 }
 0x19f   : > { %v993_v14 = vsel %vm957_vm8, %v992_v47, %v991_v21 }
 0x1a0   : > { %v982_v35 = vsel %vm949_vm6, %v981_v18, %v980_v53 }
 0x1a4   : > { %v903_v38 = vpop.xlane.xlu0 %902 }
 0x1a5   : > { %v894_v2 = vpop.xlane.xlu2 %893 }
 0x1a6   : > { %v1001_v60 = vperm.slane %v894_v2, %v1637_v46  ;;  %v1006_v46 = vperm.slane %v903_v38, %v1658_v61 }
 0x1a8   : > { %v1003_v17 = vsel %vm949_vm6, %v1002_v50, %v1001_v60 }
 0x1ad   : > { %v885_v55 = vpop.xlane.xlu2 %884 }
 0x1ae   : > { %v995_v36 = vperm.slane %v885_v55, %v1640_v32 }
 0x1b0   : > { %v996_v48 = vsel %vm949_vm6, %v995_v36, %v994_v40 }
 0x1b1   : > { %v998_v62 = vsel %vm953_vm7, %v997_v49, %v996_v48 }
 0x1b2   : > { %v1000_v32 = vsel %vm957_vm8, %v999_v63, %v998_v62 }
 0x1b5   : > { %v864_v13 = vpop.xlane.xlu2 %863 }
 0x1b6   : > { %v983_v45 = vperm.slane %v864_v13, %v1649_v42 }
 0x1b8   : > { %v984_v41 = vsel %vm953_vm7, %v983_v45, %v982_v35 }
 0x1bd   : > { %v867_v33 = vpop.xlane.xlu2 %866 }
 0x1be   : > { %v985_v39 = vperm.slane %v867_v33, %v1658_v61 }
 0x1c0   : > { %v986_v4 = vsel %vm957_vm8, %v985_v39, %v984_v41 }
 0x1c1   : > { %v1015_v58 = vsel %vm1014_vm12, %v986_v4, %v1013_v37 }
 0x1c2   : > { %v1017_v16 = vsel %vm1016_vm13, %v993_v14, %v1015_v58 }
 0x1c3   : > { %v1019_v20 = vsel %vm1018_vm14, %v1000_v32, %v1017_v16 }
 0x1c5   : > { %v900_v15 = vpop.xlane.xlu2 %899 }
 0x1c6   : > { %v1004_v54 = vperm.slane %v900_v15, %v1649_v42  ;;  %v1242_v42 = vld [vmem:[%s1759_s6] ss:$0 sm:$0xff] }
 0x1c8   : > { %v1005_v19 = vsel %vm953_vm7, %v1004_v54, %v1003_v17 }
 0x1c9   : > { %v1007_v8 = vsel %vm957_vm8, %v1006_v46, %v1005_v19 }
 0x1ca   : > { %v1021_v9 = vsel %vm1020_vm15, %v1007_v8, %v1019_v20 }
 0x1cb   : > { %1190 = vmatmul.msk.f32.vlgmr.msra.gmra.mxu0 %vm1022_vm0, %v1021_v9 }
 0x248   : > { %v1042_v61 = vpop.f32.mrf.mxu0 }
 0x249   : > { %v1043_v22 = vadd.f32 %v1242_v42, %v1042_v61 }
 0x24b   : > { %1045 = vst.msk [vmem:[%s288_s8] sm:$0xff] %vm1022_vm0, %v1043_v22 }
 0x24c   : > { %1270 = shalt.err (!%p1267_p3)
}
 0x24d   : > { %1199 = dma.vmem_to_hbm [thread:$0]  (%p1384_p5), %s1060_s9, 128, %s1062_s14, %s1047_s15  }
 0x24e PF: > { %p1205_p4 = scmp.ge.s32.totalorder %s1305_s27, 2  ;;  %s1073_s19 = sand.u32 1, %s1293_s24  }
 0x24f   : > { %s1074_s23 = scalar_lea.sflag [#allocation3], %s1073_s19 }
 0x250   : > { %p1202_p7 = pnand %p1205_p4, %p1388_p6 }
 0x252   : > { %p1203_p8 = pneg %p1202_p7 }
 0x254   : > { %1288 = dma.done.wait (%p1203_p8), %s1074_s23, 128  }
 0x255   : > { %1290 = vsyncadd (%p1203_p8), %s1074_s23, 4294967168  ;;  %p17_p9 = scmp.ge.s32.totalorder %s1372_s30, 4   ;;  %s1763_s24 = smov %s1297_s25 }
 0x256   : > { %s1764_s25 = smov %s1301_s26  ;;  %s1765_s26 = smov %s1382_s10 }
 0x257   : > { %s1766_s27 = smov %s1372_s30  ;;  %19 = sbr.rel (!%p17_p9) target bundleno = 3 (0x3), region = 86 }
 0x25c   :  { %1080 = vsyncpa [#allocation3], 1 }
 0x25d   :  { %1082 = vsyncpa [#allocation3 + $0x1], 1 }

</bundles_post_ra>
